<compile_context>
chip_gen: v5e
topology: v5e:2x2
jax: 0.10.0
libtpu: 0.0.40
codegen_flags: <defaults>
</compile_context>

<pallas_src>
import functools

import jax
import jax.numpy as jnp
import numpy as np
from jax import lax
from jax.experimental import pallas as pl
from jax.experimental.pallas import tpu as pltpu


# ---------------------------------------------------------------------------
# VMEM budgeting helpers
# ---------------------------------------------------------------------------
def _vmem_budget():
    """Per-call VMEM ceiling: ~75% of physical VMEM, 48 MiB fallback."""
    try:
        cap = int(pltpu.get_tpu_info().vmem_capacity_bytes)
        return max(32 << 20, (cap * 3) // 4)
    except Exception:
        return 48 << 20


def _vmem_limit(*buffer_bytes, budget):
    # Each BlockSpec window is double-buffered; add headroom for internal scratch.
    needed = 2 * sum(int(b) for b in buffer_bytes) + (12 << 20)
    lo = min(24 << 20, budget)
    return int(min(budget, max(lo, needed)))


# ---------------------------------------------------------------------------
# Fused kernel: pool + FC + scale in one pass over the (1, C, HW) slab
# ---------------------------------------------------------------------------
def _make_fused_kernel(inv_hw):
    def kernel(x_ref, w1_ref, w2_ref, o_ref):
        x = x_ref[...]                                                 # (1, C, HW)
        m = jnp.sum(x.astype(jnp.float32), axis=-1) * inv_hw           # (1, C) mean
        h = lax.dot_general(m, w1_ref[...].astype(jnp.float32),
                            (((1,), (1,)), ((), ())),
                            preferred_element_type=jnp.float32)        # (1, C//r)
        h = jnp.maximum(h, 0.0)                                        # ReLU
        g = lax.dot_general(h, w2_ref[...].astype(jnp.float32),
                            (((1,), (1,)), ((), ())),
                            preferred_element_type=jnp.float32)        # (1, C)
        s = jax.nn.sigmoid(g).astype(x.dtype)                          # Sigmoid, x dtype
        o_ref[...] = x * s[:, :, None]

    return kernel


# ---------------------------------------------------------------------------
# Split-path kernels (channel-tiled, only used for very large per-batch slabs)
# ---------------------------------------------------------------------------
def _pool_kernel(x_ref, sum_ref):
    # x_ref: (1, TC, HW)   sum_ref: (1, TC, 1) f32.  Full HW reduce per block,
    # no resident accumulator -> both grid axes can be "parallel".
    sum_ref[...] = jnp.sum(x_ref[...].astype(jnp.float32), axis=-1, keepdims=True)


def _make_fc_kernel(inv_hw):
    def kernel(sum_ref, w1_ref, w2_ref, s_ref):
        m = sum_ref[...][:, :, 0] * inv_hw                             # (B, C) means
        h = lax.dot_general(m, w1_ref[...].astype(jnp.float32),
                            (((1,), (1,)), ((), ())),
                            preferred_element_type=jnp.float32)        # (B, C//r)
        h = jnp.maximum(h, 0.0)
        g = lax.dot_general(h, w2_ref[...].astype(jnp.float32),
                            (((1,), (1,)), ((), ())),
                            preferred_element_type=jnp.float32)        # (B, C)
        # Emit scales already in the input dtype -> no per-tile cast downstream.
        s_ref[...] = jax.nn.sigmoid(g).astype(s_ref.dtype)[:, :, None]

    return kernel


def _scale_kernel(x_ref, s_ref, o_ref):
    # x_ref: (1, TC, HW)   s_ref: (1, TC, 1) in x dtype   o_ref: (1, TC, HW)
    o_ref[...] = x_ref[...] * s_ref[...]


def _pick_c_tile(C, bytes_per_channel, block_bytes, sublane):
    """Largest divisor of C (multiple of `sublane`) whose block fits block_bytes."""
    if C * bytes_per_channel <= block_bytes or C <= sublane:
        return C
    best = None
    tc = sublane
    while tc < C:
        if C % tc == 0 and tc * bytes_per_channel <= block_bytes:
            best = tc
        tc += sublane
    if best is None:
        best = sublane if C % sublane == 0 else C
    return best


# ---------------------------------------------------------------------------
# Public wrapper
# ---------------------------------------------------------------------------
def se_layer(x, w1, w2, *, block_bytes=None, fuse_slab_bytes=None):
    """x: (B, C, H, W); w1: (C//r, C); w2: (C, C//r). Returns (B, C, H, W)."""
    B, C, H, W = x.shape
    HW = H * W
    hidden = w1.shape[0]
    itemsize = jnp.dtype(x.dtype).itemsize
    inv_hw = 1.0 / HW

    budget = _vmem_budget()
    w_bytes = (w1.size * jnp.dtype(w1.dtype).itemsize
               + w2.size * jnp.dtype(w2.dtype).itemsize)

    slab_bytes = C * HW * itemsize                    # one batch row of x
    if fuse_slab_bytes is None:
        # in + out slabs, each double-buffered (=4 slabs), plus weights + headroom.
        fuse_slab_bytes = max(0, (budget - 2 * w_bytes - (12 << 20)) // 4)

    x3 = x.reshape(B, C, HW)                          # free, contiguous reshape

    # ---------------- fused path (common case) ----------------
    if slab_bytes <= fuse_slab_bytes:
        out3 = pl.pallas_call(
            _make_fused_kernel(inv_hw),
            out_shape=jax.ShapeDtypeStruct((B, C, HW), x.dtype),
            grid=(B,),
            in_specs=[
                pl.BlockSpec((1, C, HW), lambda b: (b, 0, 0)),
                pl.BlockSpec((hidden, C), lambda b: (0, 0)),
                pl.BlockSpec((C, hidden), lambda b: (0, 0)),
            ],
            out_specs=pl.BlockSpec((1, C, HW), lambda b: (b, 0, 0)),
            compiler_params=pltpu.CompilerParams(
                dimension_semantics=("parallel",),
                vmem_limit_bytes=_vmem_limit(2 * slab_bytes, w_bytes, budget=budget),
            ),
        )(x3, w1, w2)
        return out3.reshape(B, C, H, W)

    # ---------------- split path (very large per-batch slabs) ----------------
    if block_bytes is None:
        block_bytes = max(2 << 20, min(8 << 20, budget // 12))
    sublane = max(8, 32 // itemsize)                  # 8 for f32, 16 for bf16, ...
    tile_c = _pick_c_tile(C, HW * itemsize, block_bytes, sublane)
    n_ct = pl.cdiv(C, tile_c)                         # tile_c divides C by construction
    blk_x_bytes = tile_c * HW * itemsize

    # 1) per-(batch, channel) sums in f32; both grid axes parallel (no accumulator)
    sums = pl.pallas_call(
        _pool_kernel,
        out_shape=jax.ShapeDtypeStruct((B, C, 1), jnp.float32),
        grid=(B, n_ct),
        in_specs=[pl.BlockSpec((1, tile_c, HW), lambda b, c: (b, c, 0))],
        out_specs=pl.BlockSpec((1, tile_c, 1), lambda b, c: (b, c, 0)),
        compiler_params=pltpu.CompilerParams(
            dimension_semantics=("parallel", "parallel"),
            vmem_limit_bytes=_vmem_limit(blk_x_bytes, tile_c * 4, budget=budget),
        ),
    )(x3)

    # 2) mean -> Linear -> ReLU -> Linear -> Sigmoid, batched over B, scales in x dtype
    scales = pl.pallas_call(
        _make_fc_kernel(inv_hw),
        out_shape=jax.ShapeDtypeStruct((B, C, 1), x.dtype),
        grid=(1,),
        in_specs=[
            pl.BlockSpec((B, C, 1), lambda i: (0, 0, 0)),
            pl.BlockSpec((hidden, C), lambda i: (0, 0)),
            pl.BlockSpec((C, hidden), lambda i: (0, 0)),
        ],
        out_specs=pl.BlockSpec((B, C, 1), lambda i: (0, 0, 0)),
        compiler_params=pltpu.CompilerParams(
            dimension_semantics=("arbitrary",),
            vmem_limit_bytes=_vmem_limit(B * C * 4, w_bytes, B * C * itemsize,
                                         budget=budget),
        ),
    )(sums, w1, w2)

    # 3) out = x * s, channel-tiled, both axes parallel, all in the input dtype
    out3 = pl.pallas_call(
        _scale_kernel,
        out_shape=jax.ShapeDtypeStruct((B, C, HW), x.dtype),
        grid=(B, n_ct),
        in_specs=[
            pl.BlockSpec((1, tile_c, HW), lambda b, c: (b, c, 0)),
            pl.BlockSpec((1, tile_c, 1), lambda b, c: (b, c, 0)),
        ],
        out_specs=pl.BlockSpec((1, tile_c, HW), lambda b, c: (b, c, 0)),
        compiler_params=pltpu.CompilerParams(
            dimension_semantics=("parallel", "parallel"),
            vmem_limit_bytes=_vmem_limit(2 * blk_x_bytes, tile_c * itemsize,
                                         budget=budget),
        ),
    )(x3, scales)
    return out3.reshape(B, C, H, W)


def se_layer_ref(x, w1, w2):
    """Pure-JAX reference mirroring the PyTorch forward."""
    y = jnp.mean(x, axis=(2, 3))                    # AdaptiveAvgPool2d(1)
    y = jnp.maximum(y @ w1.T, 0.0)                  # Linear(C -> C//r) + ReLU
    y = jax.nn.sigmoid(y @ w2.T)                    # Linear(C//r -> C) + Sigmoid
    return x * y[:, :, None, None]                  # expand_as + multiply


if __name__ == "__main__":
    B, C, H, W = 2, 32, 14, 14          # HW = 196 (not a multiple of 128: no-pad path)
    reduction = 16
    hidden = C // reduction             # = 2

    key = jax.random.PRNGKey(0)
    kx, k1, k2 = jax.random.split(key, 3)
    x = jax.random.normal(kx, (B, C, H, W), dtype=jnp.float32)
    # nn.Linear weight shapes: (out_features, in_features), no bias.
    w1 = jax.random.normal(k1, (hidden, C), dtype=jnp.float32) * 0.1   # fc[0].weight
    w2 = jax.random.normal(k2, (C, hidden), dtype=jnp.float32) * 0.1   # fc[2].weight

    ref = se_layer_ref(x, w1, w2)

    # Fused single-kernel path (default for realistic SE shapes).
    fused = jax.jit(se_layer)
    out_fused = jax.block_until_ready(fused(x, w1, w2))
    np.testing.assert_allclose(np.asarray(out_fused), np.asarray(ref),
                               rtol=1e-5, atol=1e-5)

    # Split path: force it (fuse_slab_bytes=0) with a tiny block budget so the
    # channel-tiled pool/FC/scale kernels (tile_c=16, 2 C-tiles) are exercised.
    split = jax.jit(functools.partial(se_layer, fuse_slab_bytes=0,
                                      block_bytes=16 << 10))
    out_split = jax.block_until_ready(split(x, w1, w2))
    np.testing.assert_allclose(np.asarray(out_split), np.asarray(ref),
                               rtol=1e-5, atol=1e-5)

    print("KERNEL_OK")
</pallas_src>

<mosaic_0001>
module attributes {stable_mosaic.version = 11 : i64} {
  func.func @kernel(%arg0: i32, %arg1: memref<1x32x196xf32, #tpu.memory_space<vmem>>, %arg2: memref<2x32xf32, #tpu.memory_space<vmem>>, %arg3: memref<32x2xf32, #tpu.memory_space<vmem>>, %arg4: memref<1x32x196xf32, #tpu.memory_space<vmem>>) attributes {dimension_semantics = [#tpu.dimension_semantics<parallel>], iteration_bounds = array<i64: 2>, scalar_prefetch = 0 : i64, scratch_operands = 0 : i64, tpu.core_type = #tpu.core_type<tc>, window_params = [{transform_indices = @transform_0, window_bounds = array<i64: 1, 32, 196>}, {pipeline_mode = #tpu.pipeline_mode<synchronous>, transform_indices = @transform_1, window_bounds = array<i64: 2, 32>}, {pipeline_mode = #tpu.pipeline_mode<synchronous>, transform_indices = @transform_2, window_bounds = array<i64: 32, 2>}, {transform_indices = @transform_3, window_bounds = array<i64: 1, 32, 196>}]} {
    %c0 = arith.constant 0 : index
    %c0_0 = arith.constant 0 : index
    %c0_1 = arith.constant 0 : index
    %0 = vector.load %arg1[%c0, %c0_0, %c0_1] : memref<1x32x196xf32, #tpu.memory_space<vmem>>, vector<1x32x196xf32>
    %cst = arith.constant dense<0.000000e+00> : vector<1x32xf32>
    %1 = vector.multi_reduction <add>, %0, %cst [2] : vector<1x32x196xf32> to vector<1x32xf32>
    %cst_2 = arith.constant 0.00510204071 : f32
    %2 = vector.broadcast %cst_2 : f32 to vector<1x32xf32>
    %3 = arith.mulf %1, %2 : vector<1x32xf32>
    %c0_3 = arith.constant 0 : index
    %c0_4 = arith.constant 0 : index
    %4 = vector.load %arg2[%c0_3, %c0_4] : memref<2x32xf32, #tpu.memory_space<vmem>>, vector<2x32xf32>
    %cst_5 = arith.constant dense<0.000000e+00> : vector<1x2xf32>
    %5 = tpu.matmul %3, %4, %cst_5 {dimension_numbers = #tpu.dot_dimension_numbers<[1], [1], [0], [0], [0, 0, 1, 0], [], []>} : vector<1x32xf32>, vector<2x32xf32>, vector<1x2xf32> -> vector<1x2xf32>
    %cst_6 = arith.constant 0.000000e+00 : f32
    %6 = vector.broadcast %cst_6 : f32 to vector<1x2xf32>
    %7 = arith.maximumf %5, %6 : vector<1x2xf32>
    %c0_7 = arith.constant 0 : index
    %c0_8 = arith.constant 0 : index
    %8 = vector.load %arg3[%c0_7, %c0_8] : memref<32x2xf32, #tpu.memory_space<vmem>>, vector<32x2xf32>
    %cst_9 = arith.constant dense<0.000000e+00> : vector<1x32xf32>
    %9 = tpu.matmul %7, %8, %cst_9 {dimension_numbers = #tpu.dot_dimension_numbers<[1], [1], [0], [0], [0, 0, 1, 0], [], []>} : vector<1x2xf32>, vector<32x2xf32>, vector<1x32xf32> -> vector<1x32xf32>
    %10 = arith.negf %9 : vector<1x32xf32>
    %11 = math.exp %10 : vector<1x32xf32>
    %cst_10 = arith.constant 1.000000e+00 : f32
    %12 = vector.broadcast %cst_10 : f32 to vector<1x32xf32>
    %13 = arith.addf %12, %11 : vector<1x32xf32>
    %14 = arith.divf %12, %13 : vector<1x32xf32>
    %15 = vector.shape_cast %14 : vector<1x32xf32> to vector<1x32x1xf32>
    %16 = vector.broadcast %15 : vector<1x32x1xf32> to vector<1x32x196xf32>
    %17 = arith.mulf %0, %16 : vector<1x32x196xf32>
    %c0_11 = arith.constant 0 : index
    %c0_12 = arith.constant 0 : index
    %c0_13 = arith.constant 0 : index
    %18 = vector.load %arg4[%c0_11, %c0_12, %c0_13] : memref<1x32x196xf32, #tpu.memory_space<vmem>>, vector<1x32x196xf32>
    tpu.vector_store %arg4[%c0_11, %c0_12, %c0_13], %17 {strides = array<i32>} : memref<1x32x196xf32, #tpu.memory_space<vmem>>, vector<1x32x196xf32>,
    return
  }
  func.func @transform_0(%arg0: i32) -> (i32, i32, i32) {
    %c0_i32 = arith.constant 0 : i32
    %c0_i32_0 = arith.constant 0 : i32
    %c0_i32_1 = arith.constant 0 : i32
    return %arg0, %c0_i32, %c0_i32_0 : i32, i32, i32
  }
  func.func @transform_1(%arg0: i32) -> (i32, i32) {
    %c0_i32 = arith.constant 0 : i32
    %c0_i32_0 = arith.constant 0 : i32
    %c0_i32_1 = arith.constant 0 : i32
    return %c0_i32, %c0_i32_0 : i32, i32
  }
  func.func @transform_2(%arg0: i32) -> (i32, i32) {
    %c0_i32 = arith.constant 0 : i32
    %c0_i32_0 = arith.constant 0 : i32
    %c0_i32_1 = arith.constant 0 : i32
    return %c0_i32, %c0_i32_0 : i32, i32
  }
  func.func @transform_3(%arg0: i32) -> (i32, i32, i32) {
    %c0_i32 = arith.constant 0 : i32
    %c0_i32_0 = arith.constant 0 : i32
    %c0_i32_1 = arith.constant 0 : i32
    return %arg0, %c0_i32, %c0_i32_0 : i32, i32, i32
  }
}

</mosaic_0001>

<bundles_post_ra>
// kernel: se_layer.1
= control target key start
LH: loop header
LB: loop body
LE: loop exit
PB: predicated region body
PF: predicated region fallthrough
CT: control target
= control target key end

     0   :  { %s468_s12 = smov 0   ;;  %s554_s0 = inlined_call_operand.vmem [shape: f32[2,32,196], index: 0, kind: input, shape index: {}]   ;;  %s555_s1 = inlined_call_operand.vmem [shape: f32[2,32], index: 1, kind: input, shape index: {}]   ;;  %s556_s2 = inlined_call_operand.vmem [shape: f32[32,2], index: 2, kind: input, shape index: {}]   ;;  %s557_s3 = inlined_call_operand.vmem [shape: f32[2,32,196], index: 3, kind: output, shape index: {}]  }
   0x1 LB: > { %s402_s13 = sadd.s32 4294967295, %s446_s12   ;;  %p406_p0 = scmp.ge.s32.totalorder %s446_s12, 1  ;;  %s446_s12 = sphi %s468_s12, %s13_s12  }
   0x2   : > { %p137_p1 = scmp.lt.s32.totalorder %s446_s12, 3 }
   0x4   : > { %p138_p2 = pnand %p406_p0, %p137_p1 }
   0x5   : > { %p161_p3 = scmp.lt.s32.totalorder (!%p138_p2), %s402_s13, 1 }
   0x6   : > { %141 = sbr.rel (%p138_p2) target bundleno = 554 (0x22a), region = 32 }
   0xb   : > { %s559_s13 = smov (!%p161_p3, %s402_s13), 1  ;;  %vm179_vm0 = vcmask 556032   ;;  %v200_v16 = vld [vmem:[%s555_s1] sm:$0x3]  ;;  %vm220_vm1 = vcmask 261120   ;;  %v250_v17 = vld [vmem:[%s556_s2 + $0x18] sm:$0xff]  ;;  %v205_v20 = vlaneseq }
   0xc   : > { %s421_s14 = sshll.u32 %s559_s13, 6  ;;  %411 = vmatpush.xpose.msk.msra.mxu0 %vm220_vm1, %v200_v16  ;;  %vm251_vm2 = vcmask 15360   ;;  %v249_v18 = vld [vmem:[%s556_s2 + $0x10] sm:$0xff]  ;;  %v248_v19 = vld [vmem:[%s556_s2 + $0x8] sm:$0xff]  ;;  %vm210_vm3 = vcmask 130112   ;;  %vm214_vm4 = vcmask 195712  }
   0xd   : > { %s165_s17 = scalar_lea.vmem %s554_s0, %s421_s14  ;;  %413 = vmatpush.xpose.msk.msra.mxu1 %vm251_vm2, %v250_v17  ;;  %v206_v23 = vand.u32 127, %v205_v20  ;;  %vm218_vm5 = vcmask 261312   ;;  %v247_v40 = vld [vmem:[%s556_s2] sm:$0xff]  ;;  %v308_v43 = vshrl.u32 %v205_v20, 7  ;;  %s170_s30 = scalar_lea.vmem %s557_s3, %s421_s14 }
   0xe   : > { %v484_v0 = vld [vmem:[%s165_s17] sm:$0xff]  ;;  %v486_v1 = vld [vmem:[%s165_s17 + $0x8] sm:$0xff]  ;;  %v497_v7 = vld [vmem:[%s165_s17 + $0x18] sm:$0xff] }
   0xf   : > { %v488_v2 = vld [vmem:[%s165_s17 + $0x20] sm:$0xff]  ;;  %v180_v3 = vsel %vm179_vm0, %v486_v1, 0.0  ;;  %v492_v4 = vld [vmem:[%s165_s17 + $0x28] sm:$0xff]  ;;  %v500_v9 = vld [vmem:[%s165_s17 + $0x38] sm:$0xff]  ;;  %v184_v11 = vsel %vm179_vm0, %v497_v7, 0.0  ;;  %v208_v25 = vadd.s32 4294967288, %v206_v23  ;;  %431 = vset.pattern.permute.xlu2 %v308_v43 }
  0x10   : > { %v181_v5 = vadd.f32 %v180_v3, %v484_v0  ;;  %v188_v6 = vsel %vm179_vm0, %v492_v4, 0.0  ;;  %v502_v10 = vld [vmem:[%s165_s17 + $0x10] sm:$0xff]  ;;  %v192_v13 = vsel %vm179_vm0, %v500_v9, 0.0  ;;  %v212_v26 = vadd.s32 4294967280, %v206_v23 }
  0x11   : > { %v189_v8 = vadd.f32 %v188_v6, %v488_v2  ;;  %v506_v12 = vld [vmem:[%s165_s17 + $0x30] sm:$0xff]  ;;  %v185_v14 = vadd.f32 %v184_v11, %v502_v10  ;;  %414 = vmatpush.xpose.msk.msra.mxu1 %vm251_vm2, %v249_v18  ;;  %v216_v29 = vadd.s32 4294967272, %v206_v23  ;;  %v327_v44 = vadd.s32 24, %v308_v43 }
  0x12   : > { %182 = vadd.xlane.f32.xlu0 %v181_v5  ;;  %v193_v15 = vadd.f32 %v192_v13, %v506_v12  ;;  %v321_v45 = vadd.s32 16, %v308_v43  ;;  %v315_v61 = vadd.s32 8, %v308_v43 }
  0x13   : > { %190 = vadd.xlane.f32.xlu1 %v189_v8 }
  0x14   : > { %434 = vset.pattern.permute.xlu1 %v327_v44  ;;  %433 = vset.pattern.permute.xlu0 %v321_v45 }
  0x15   : > { %415 = vmatpush.xpose.msk.msra.mxu1 %vm251_vm2, %v248_v19 }
  0x19   : > { %416 = vmatpush.xpose.msk.msra.mxu1 %vm251_vm2, %v247_v40 }
  0x1a   : > { %186 = vadd.xlane.f32.xlu0 %v185_v14 }
  0x1b   : > { %194 = vadd.xlane.f32.xlu1 %v193_v15 }
  0x85   : > { %v183_v21 = vpop.xlane.xlu0 %182 }
  0x86   : > { %v191_v22 = vpop.xlane.xlu1 %190  ;;  %v196_v24 = vmul.f32 0.0051020407, %v183_v21 }
  0x87   : > { %v198_v27 = vmul.f32 0.0051020407, %v191_v22 }
  0x88   : > { %v207_v33 = vperm.slane %v196_v24, %v206_v23 }
  0x89   : > { %v213_v35 = vperm.slane %v198_v27, %v212_v26 }
  0x8d   : > { %v187_v28 = vpop.xlane.xlu0 %186 }
  0x8e   : > { %v197_v30 = vmul.f32 0.0051020407, %v187_v28  ;;  %v195_v31 = vpop.xlane.xlu1 %194 }
  0x8f   : > { %v199_v32 = vmul.f32 0.0051020407, %v195_v31 }
  0x90   : > { %v209_v34 = vperm.slane %v197_v30, %v208_v25 }
  0x91   : > { %v217_v36 = vperm.slane %v199_v32, %v216_v29 }
  0x92   : > { %v211_v37 = vsel %vm210_vm3, %v209_v34, %v207_v33 }
  0x93   : > { %v215_v38 = vsel %vm214_vm4, %v213_v35, %v211_v37 }
  0x94   : > { %v219_v39 = vsel %vm218_vm5, %v217_v36, %v215_v38 }
  0x95   : > { %412 = vmatmul.msk.f32.vlgmr.msra.gmra.mxu0 %vm220_vm1, %v219_v39 }
 0x112   : > { %v243_v41 = vpop.f32.mrf.mxu0 }
 0x113   : > { %v246_v42 = vmax.f32 %v243_v41, 0.0 }
 0x115   : > { %417 = vmatmul.msk.f32.vlgmr.msra.gmra.mxu1 %vm251_vm2, %v246_v42 }
 0x192   : > { %v284_v46 = vpop.f32.mrf.mxu1 }
 0x193   : > { %v418_v47 = vmul.f32 -1.442695, %v284_v46 }
 0x195   : > { %436 = vpow2.f32 %v418_v47 }
 0x19b   : > { %v437_v48 = vpop.eup %436 }
 0x19c   : > { %v290_v49 = vadd.f32 1.0, %v437_v48 }
 0x19e   : > { %438 = vrcp.f32 %v290_v49  ;;  %v302_v53 = vand.u32 2147483648, %v290_v49  ;;  %v300_v55 = vand.u32 2147483647, %v290_v49  ;;  %vm296_vm7 = vweird.f32 %v290_v49 }
 0x1a0   : > { %v303_v57 = vor.u32 1.1754944e-38, %v302_v53  ;;  %vm301_vm9 = vcmp.eq.f32.partialorder %v300_v55, 8.507059e+37 }
 0x1a4   : > { %v439_v50 = vpop.eup %438 }
 0x1a5   : > { %v292_v51 = vmul.f32 %v439_v50, %v290_v49  ;;  %vm297_vm6 = vweird.f32 %v439_v50 }
 0x1a6   : > { %vm298_vm8 = vmor %vm296_vm7, %vm297_vm6 }
 0x1a7   : > { %v293_v52 = vsub.f32 1.0, %v292_v51 }
 0x1a9   : > { %v294_v54 = vmul.f32 %v439_v50, %v293_v52 }
 0x1ab   : > { %v295_v56 = vadd.f32 %v439_v50, %v294_v54 }
 0x1ad   : > { %v299_v58 = vsel %vm298_vm8, %v439_v50, %v295_v56 }
 0x1ae   : > { %v304_v59 = vsel %vm301_vm9, %v303_v57, %v299_v58 }
 0x1af   : > { %v306_v60 = vperm.slane %v304_v59, 0 }
 0x1b1   : > { %329 = vperm.xlu1 %434, %v306_v60   ;;  %323 = vperm.xlu0 %433, %v306_v60  }
 0x1b2   : > { %311 = vperm.xlu2 %431, %v306_v60  }
 0x1b9   : > { %435 = vset.pattern.permute.xlu0 %v327_v44 }
 0x1ba   : > { %432 = vset.pattern.permute.xlu2 %v315_v61 }
 0x1c2   : > { %317 = vperm.xlu2 %432, %v306_v60  }
 0x20c   : > { %v312_v62 = vpop.permute.xlu2 %311 }
 0x20d   : > { %v331_v63 = vmul.f32 %v312_v62, %v484_v0  ;;  %v332_v3 = vmul.f32 %v312_v62, %v486_v1 }
 0x20f   : > { %339 = vst [vmem:[%s170_s30] sm:$0xff] %v331_v63 }
 0x210   : > { %340 = vst.msk [vmem:[%s170_s30 + $0x8] sm:$0xff] %vm179_vm0, %v332_v3 }
 0x21c   : > { %v318_v5 = vpop.permute.xlu2 %317 }
 0x21d   : > { %v333_v6 = vmul.f32 %v318_v5, %v502_v10  ;;  %v334_v8 = vmul.f32 %v318_v5, %v497_v7 }
 0x21f   : > { %341 = vst [vmem:[%s170_s30 + $0x10] sm:$0xff] %v333_v6 }
 0x220   : > { %342 = vst.msk [vmem:[%s170_s30 + $0x18] sm:$0xff] %vm179_vm0, %v334_v8 }
 0x223   : > { %v330_v11 = vpop.permute.xlu1 %329  ;;  %v324_v13 = vpop.permute.xlu0 %323 }
 0x224   : > { %v337_v14 = vmul.f32 %v330_v11, %v506_v12  ;;  %v338_v15 = vmul.f32 %v330_v11, %v500_v9  ;;  %v335_v0 = vmul.f32 %v324_v13, %v488_v2  ;;  %v336_v1 = vmul.f32 %v324_v13, %v492_v4 }
 0x226   : > { %345 = vst [vmem:[%s170_s30 + $0x30] sm:$0xff] %v337_v14 }
 0x227   : > { %346 = vst.msk [vmem:[%s170_s30 + $0x38] sm:$0xff] %vm179_vm0, %v338_v15 }
 0x228   : > { %343 = vst [vmem:[%s170_s30 + $0x20] sm:$0xff] %v335_v0 }
 0x229   : > { %344 = vst.msk [vmem:[%s170_s30 + $0x28] sm:$0xff] %vm179_vm0, %v336_v1 }
 0x22a PF: > { %s13_s12 = sadd.s32 1, %s446_s12  }
 0x22b   : > { %p10_p4 = scmp.ge.s32.totalorder %s13_s12, 4  }
 0x22d   :  { %12 = sbr.rel (!%p10_p4) target bundleno = 1 (0x1), region = 62 }

</bundles_post_ra>
